<compile_context>
chip_gen: v5e
topology: v5e:2x2
jax: 0.10.0
libtpu: 0.0.40
codegen_flags: <defaults>
</compile_context>

<pallas_src>
import jax
import jax.numpy as jnp
from jax.experimental import pallas as pl
from jax.experimental.pallas import tpu as pltpu


def _round_up(x: int, m: int) -> int:
    return ((x + m - 1) // m) * m


def _default_tile_m() -> int:
    """Pick an M tile per TPU generation.

    Note: queries jax.devices() at call time; pass tile_m explicitly when
    AOT-compiling for a different target (review correctness note).
    """
    kind = ""
    try:
        kind = jax.devices()[0].device_kind.lower()
    except Exception:  # pragma: no cover - defensive
        pass
    # v6e / v7x (device_kind may read "TPU v6e", "TPU v6 lite", "TPU7x", ...)
    if any(tok in kind for tok in ("v6", "v7", "7x", "tpu7")):
        return 1024   # multiple of 256 for the 2x256x256 MXU
    # v5e and older (4x128x128 MXU); 512 keeps the per-step footprint well
    # inside the 16 MiB default scoped VMEM even with f32 output.
    return 512


def _resident_spec(block_shape, index_map):
    """BlockSpec for an operand whose block never changes across the grid.

    Requests single-buffering (no wasted second VMEM buffer); falls back to a
    plain (double-buffered) spec on JAX versions without pipeline_mode.
    """
    if hasattr(pl, "Buffered"):
        try:
            return pl.BlockSpec(block_shape, index_map, pipeline_mode=pl.Buffered(1))
        except TypeError:  # old BlockSpec signature
            pass
    return pl.BlockSpec(block_shape, index_map)


def _patch_embed_kernel(x_ref, w_ref, b_ref, o_ref):
    # x_ref: (TM, K_pad)     patch tile (bf16 or f32)
    # w_ref: (K_pad, E_pad)  projection weight, VMEM-resident across the grid
    # b_ref: (1,    E_pad)   bias (f32)
    # o_ref: (TM,   E_pad)   output tile (bf16 or f32)
    acc = jnp.dot(x_ref[...], w_ref[...], preferred_element_type=jnp.float32)
    # Bias add rides in a spare VALU slot; cast to the output dtype on store.
    o_ref[...] = (acc + b_ref[...]).astype(o_ref.dtype)


def patch_embed_matmul(patches, weight, bias2d, *, out_dtype, tile_m=None):
    """patches: [M, K_pad], weight: [K_pad, E_pad], bias2d: [1, E_pad] -> [M, E_pad]."""
    M, K = patches.shape
    K2, E_pad = weight.shape
    assert K == K2

    if tile_m is None:
        tile_m = _default_tile_m()

    # 16-row alignment: satisfies bf16 sublane packing (and the f32 8-row rule).
    align = 16
    if M <= align:
        tm = M  # full-extent block is always legal
    else:
        # Keep >= 2 grid steps so the "parallel" M axis can split across the
        # two v7x TensorCores even at small batch; cheap on single-TC chips.
        tm = min(tile_m, _round_up(pl.cdiv(M, 2), align))
    grid_m = pl.cdiv(M, tm)

    in_itemsize = jnp.dtype(patches.dtype).itemsize
    w_itemsize = jnp.dtype(weight.dtype).itemsize
    out_itemsize = jnp.dtype(out_dtype).itemsize

    cost = pl.CostEstimate(
        flops=2 * M * K * E_pad,
        transcendentals=0,
        bytes_accessed=(
            M * K * in_itemsize
            + K * E_pad * w_itemsize
            + E_pad * 4
            + M * E_pad * out_itemsize
        ),
    )

    # Per-step footprint: double-buffered patch/out tiles + (resident) weight
    # and bias; add headroom, clamp well below v7x's 64 MiB physical VMEM.
    need = (
        2 * (tm * K * in_itemsize + tm * E_pad * out_itemsize)
        + 2 * (K * E_pad * w_itemsize + E_pad * 4)
    )
    vmem_limit = int(min(max(need + (8 << 20), 24 << 20), 48 << 20))

    return pl.pallas_call(
        _patch_embed_kernel,
        out_shape=jax.ShapeDtypeStruct((M, E_pad), out_dtype),
        grid=(grid_m,),
        in_specs=[
            pl.BlockSpec((tm, K), lambda i: (i, 0)),        # patch tile, pipelined
            _resident_spec((K, E_pad), lambda i: (0, 0)),   # weight: VMEM-resident
            _resident_spec((1, E_pad), lambda i: (0, 0)),   # bias:   VMEM-resident
        ],
        out_specs=pl.BlockSpec((tm, E_pad), lambda i: (i, 0)),
        compiler_params=pltpu.CompilerParams(
            dimension_semantics=("parallel",),   # megacore sharding on v7x
            vmem_limit_bytes=vmem_limit,
        ),
        cost_estimate=cost,
    )(patches, weight, bias2d)


def prepare_patch_embed_params(conv_weight, conv_bias, compute_dtype=jnp.bfloat16):
    """One-time (init) prep of Conv2d params for the kernel.

    conv_weight: [E, C, p, p] (PyTorch Conv2d layout), conv_bias: [E].
    Returns (w [K_pad, E_pad] in compute_dtype, bias [1, E_pad] f32, embed_dim E).
    Zero-padded K rows / E columns are numerically inert.
    """
    E, C, ph, pw = conv_weight.shape
    K = C * ph * pw
    w = conv_weight.reshape(E, K).T          # [K, E]; reduction order matches Conv2d
    b = conv_bias.reshape(1, E)
    K_pad = _round_up(K, 128)                # lane-aligned contraction axis
    E_pad = _round_up(E, 128)                # lane-dense output (unmasked vst)
    if K_pad != K or E_pad != E:
        w = jnp.pad(w, ((0, K_pad - K), (0, E_pad - E)))
    if E_pad != E:
        b = jnp.pad(b, ((0, 0), (0, E_pad - E)))
    return w.astype(compute_dtype), b.astype(jnp.float32), E


def patch_embed_forward(x, w_prepped, b_prepped, embed_dim, patch_size, *,
                        out_dtype=None, tile_m=None):
    """
    x:           [B, C, H, W]    (NCHW, like PyTorch)
    w_prepped:   [K_pad, E_pad]  from prepare_patch_embed_params
    b_prepped:   [1, E_pad]
    returns:     [B, num_patches, embed_dim]
    """
    B, C, H, W = x.shape
    p = patch_size
    Hp, Wp = H // p, W // p
    num_patches = Hp * Wp
    if out_dtype is None:
        # Emit the compute dtype (bf16 on the MXU-native path) — review item:
        # the f32 output write is otherwise the largest single bytes term.
        out_dtype = w_prepped.dtype

    # Cast before the extraction transpose so the XLA-side relayout moves half
    # the bytes when compute_dtype is bf16.
    xc = x.astype(w_prepped.dtype)

    # Patch extraction (still XLA-side; see TODO(synk) at the top of the file).
    patches = xc.reshape(B, C, Hp, p, Wp, p)
    patches = patches.transpose(0, 2, 4, 1, 3, 5)              # [B, Hp, Wp, C, p, p]
    patches = patches.reshape(B * num_patches, C * p * p)      # [M, K]

    K = C * p * p
    K_pad = w_prepped.shape[0]
    if K_pad != K:
        # Zero rows in the prepared weight make the extra columns inert.
        patches = jnp.pad(patches, ((0, 0), (0, K_pad - K)))

    out = patch_embed_matmul(patches, w_prepped, b_prepped,
                             out_dtype=out_dtype, tile_m=tile_m)  # [M, E_pad]
    # Drop lane padding (no-op for ViT widths 768/1024; fuses with the reshape).
    out = out[:, :embed_dim]
    return out.reshape(B, num_patches, embed_dim)


if __name__ == "__main__":
    # Small shapes consistent with the module: img_size=16, patch_size=4,
    # in_chans=4, embed_dim=32, batch=2  ->  num_patches = (16//4)**2 = 16.
    B, C, H, W = 2, 4, 16, 16
    patch_size = 4
    embed_dim = 32

    key = jax.random.PRNGKey(0)
    kx, kw, kb = jax.random.split(key, 3)
    x = jax.random.normal(kx, (B, C, H, W), dtype=jnp.float32)
    conv_weight = jax.random.normal(
        kw, (embed_dim, C, patch_size, patch_size), dtype=jnp.float32) * 0.02
    conv_bias = jax.random.normal(kb, (embed_dim,), dtype=jnp.float32) * 0.02

    # Reference: same semantics as PyTorch Conv2d + flatten(2).transpose(1, 2).
    ref = jax.lax.conv_general_dilated(
        x, conv_weight,
        window_strides=(patch_size, patch_size),
        padding="VALID",
        dimension_numbers=("NCHW", "OIHW", "NCHW"),
    ) + conv_bias.reshape(1, embed_dim, 1, 1)
    ref = ref.reshape(B, embed_dim, -1).transpose(0, 2, 1)
    num_patches = (H // patch_size) * (W // patch_size)

    # --- f32 compute path (strict numerical check) ---
    w32, b32, E = prepare_patch_embed_params(conv_weight, conv_bias,
                                             compute_dtype=jnp.float32)
    fwd_f32 = jax.jit(lambda xx: patch_embed_forward(
        xx, w32, b32, E, patch_size, out_dtype=jnp.float32))
    out_f32 = fwd_f32(x)
    jax.block_until_ready(out_f32)
    assert out_f32.shape == (B, num_patches, embed_dim)
    assert jnp.allclose(out_f32, ref, atol=1e-4, rtol=1e-4)

    # --- bf16 compute path (MXU-native operands, f32 accumulation, bf16 out) ---
    wbf, bbf, _ = prepare_patch_embed_params(conv_weight, conv_bias,
                                             compute_dtype=jnp.bfloat16)
    fwd_bf16 = jax.jit(lambda xx: patch_embed_forward(
        xx, wbf, bbf, E, patch_size))          # out_dtype defaults to bf16
    out_bf16 = fwd_bf16(x)
    jax.block_until_ready(out_bf16)
    assert out_bf16.shape == (B, num_patches, embed_dim)
    assert out_bf16.dtype == jnp.bfloat16
    assert jnp.allclose(out_bf16.astype(jnp.float32), ref, atol=3e-2, rtol=3e-2)

    print("KERNEL_OK")
</pallas_src>

<mosaic_0001>
module attributes {stable_mosaic.version = 11 : i64} {
  func.func @_patch_embed_kernel(%arg0: i32, %arg1: memref<16x128xf32, #tpu.memory_space<vmem>>, %arg2: memref<128x128xf32, #tpu.memory_space<vmem>>, %arg3: memref<1x128xf32, #tpu.memory_space<vmem>>, %arg4: memref<16x128xf32, #tpu.memory_space<vmem>>) attributes {dimension_semantics = [#tpu.dimension_semantics<parallel>], iteration_bounds = array<i64: 2>, scalar_prefetch = 0 : i64, scratch_operands = 0 : i64, tpu.core_type = #tpu.core_type<tc>, window_params = [{transform_indices = @transform_0, window_bounds = array<i64: 16, 128>}, {pipeline_mode = #tpu.pipeline_mode<synchronous>, transform_indices = @transform_1, window_bounds = array<i64: 128, 128>}, {pipeline_mode = #tpu.pipeline_mode<synchronous>, transform_indices = @transform_2, window_bounds = array<i64: 1, 128>}, {transform_indices = @transform_3, window_bounds = array<i64: 16, 128>}]} {
    %c0 = arith.constant 0 : index
    %c0_0 = arith.constant 0 : index
    %0 = vector.load %arg1[%c0, %c0_0] : memref<16x128xf32, #tpu.memory_space<vmem>>, vector<16x128xf32>
    %c0_1 = arith.constant 0 : index
    %c0_2 = arith.constant 0 : index
    %1 = vector.load %arg2[%c0_1, %c0_2] : memref<128x128xf32, #tpu.memory_space<vmem>>, vector<128x128xf32>
    %cst = arith.constant dense<0.000000e+00> : vector<16x128xf32>
    %2 = tpu.matmul %0, %1, %cst {dimension_numbers = #tpu.dot_dimension_numbers<[1], [0], [0], [1], [0, 0, 1, 1], [], []>} : vector<16x128xf32>, vector<128x128xf32>, vector<16x128xf32> -> vector<16x128xf32>
    %c0_3 = arith.constant 0 : index
    %c0_4 = arith.constant 0 : index
    %3 = vector.load %arg3[%c0_3, %c0_4] : memref<1x128xf32, #tpu.memory_space<vmem>>, vector<1x128xf32>
    %4 = vector.broadcast %3 : vector<1x128xf32> to vector<16x128xf32>
    %5 = arith.addf %2, %4 : vector<16x128xf32>
    %c0_5 = arith.constant 0 : index
    %c0_6 = arith.constant 0 : index
    %6 = vector.load %arg4[%c0_5, %c0_6] : memref<16x128xf32, #tpu.memory_space<vmem>>, vector<16x128xf32>
    tpu.vector_store %arg4[%c0_5, %c0_6], %5 {strides = array<i32>} : memref<16x128xf32, #tpu.memory_space<vmem>>, vector<16x128xf32>,
    return
  }
  func.func @transform_0(%arg0: i32) -> (i32, i32) {
    %c0_i32 = arith.constant 0 : i32
    %c0_i32_0 = arith.constant 0 : i32
    return %arg0, %c0_i32 : i32, i32
  }
  func.func @transform_1(%arg0: i32) -> (i32, i32) {
    %c0_i32 = arith.constant 0 : i32
    %c0_i32_0 = arith.constant 0 : i32
    %c0_i32_1 = arith.constant 0 : i32
    return %c0_i32, %c0_i32_0 : i32, i32
  }
  func.func @transform_2(%arg0: i32) -> (i32, i32) {
    %c0_i32 = arith.constant 0 : i32
    %c0_i32_0 = arith.constant 0 : i32
    %c0_i32_1 = arith.constant 0 : i32
    return %c0_i32, %c0_i32_0 : i32, i32
  }
  func.func @transform_3(%arg0: i32) -> (i32, i32) {
    %c0_i32 = arith.constant 0 : i32
    %c0_i32_0 = arith.constant 0 : i32
    return %arg0, %c0_i32 : i32, i32
  }
}

</mosaic_0001>

<bundles_post_ra>
// kernel: _lambda_.1
= control target key start
LH: loop header
LB: loop body
LE: loop exit
PB: predicated region body
PF: predicated region fallthrough
CT: control target
= control target key end

     0   :  { %8 = vsyncpa [#allocation3], 0  ;;  %s589_s0 = inlined_call_operand.vmem [shape: f32[32,128], index: 0, kind: input, shape index: {}]   ;;  %s590_s1 = inlined_call_operand.vmem [shape: f32[128,128], index: 1, kind: input, shape index: {}]   ;;  %s591_s2 = inlined_call_operand.vmem [shape: f32[1,128], index: 2, kind: input, shape index: {}]   ;;  %s592_s3 = inlined_call_operand.hbm [shape: f32[32,128], index: 3, kind: output, shape index: {}]  }
   0x1   :  { %10 = vsyncpa [#allocation3 + $0x1], 0  ;;  %s454_s12 = smov 0   ;;  %s456_s13 = smov 0  }
   0x2   :  { %s458_s14 = smov 0   ;;  %s460_s15 = smov 0  }
   0x3 LB: > { %s475_s16 = sadd.s32 4294967295, %s430_s15   ;;  %s297_s17 = sadd.s32 4294967294, %s430_s15   ;;  %s430_s15 = sphi %s460_s15, %s598_s15   ;;  %s426_s14 = sphi %s458_s14, %s597_s14   ;;  %s422_s13 = sphi %s456_s13, %s596_s13   ;;  %s418_s12 = sphi %s454_s12, %s595_s12  }
   0x4   : > { %s479_s18 = sadd.s32 1, %s430_s15   ;;  %s91_s19 = sadd.s32 1, %s426_s14 }
   0x5   : > { %s88_s20 = ssub.s32 %s430_s15, %s479_s18  ;;  %p101_p0 = scmp.ne.s32.totalorder %s426_s14, %s422_s13 }
   0x6   : > { %p89_p1 = scmp.eq.s32.totalorder %s88_s20, 0  ;;  %p102_p2 = scmp.eq.s32.totalorder %s475_s16, 1 }
   0x7   : > { %p107_p3 = scmp.ne.s32.totalorder %s422_s13, %s418_s12  ;;  %p108_p4 = scmp.eq.s32.totalorder %s297_s17, 1 }
   0x8   : > { %s490_s21 = scalar_select %p89_p1, %s426_s14, %s91_s19  }
   0x9   : > { %p492_p5 = por %p102_p2, %p101_p0  ;;  %p496_p6 = por %p108_p4, %p107_p3 }
   0xa   : > { %p300_p7 = scmp.ge.s32.totalorder %s430_s15, 1  ;;  %p141_p8 = scmp.lt.s32.totalorder %s430_s15, 3 }
   0xc   : > { %p142_p9 = pnand %p300_p7, %p141_p8 }
   0xd   : > { %s302_s19 = sshll.u32 (!%p142_p9), %s475_s16, 1  ;;  %s162_s25 = sand.u32 (!%p142_p9), 1, %s422_s13  }
   0xe   : > { %145 = sbr.rel (%p142_p9) target bundleno = 184 (0xb8), region = 32  ;;  %p166_p10 = scmp.lt.s32.totalorder (!%p142_p9), %s302_s19, 3 }
   0xf   : > { %s301_s26 = sshll.u32 (!%p142_p9), %s162_s25, 4  ;;  %s309_s27 = sshll.u32 (!%p142_p9), %s475_s16, 4 }
  0x10   : > { %s231_s30 = scalar_lea.hbm (!%p142_p9), %s592_s3, %s309_s27  ;;  %s220_s16 = scalar_lea.sflag (!%p142_p9), [#allocation3], %s162_s25 }
  0x11   : > { %s234_s8 = sshll.u32 (!%p142_p9), %s231_s30, 4  ;;  %s235_s8 = int_to_ptr.hbm [resolvable:$true] %s234_s8 }
  0x12   : > { %s382_s9 = sshra.s32 (!%p142_p9), %s235_s8, 4  ;;  %s383_s9 = int_to_ptr.hbm [resolvable:$true] %s382_s9 }
  0x13   : > { %v189_v0 = vld [vmem:[%s590_s1 + $0x78] sm:$0xff]  ;;  %v188_v1 = vld [vmem:[%s590_s1 + $0x70] sm:$0xff]  ;;  %v187_v2 = vld [vmem:[%s590_s1 + $0x68] sm:$0xff]  ;;  %s600_s19 = smov (!%p166_p10, %s302_s19), 3  ;;  %s384_s10 = scalar_lea.hbm %s383_s9, 16 }
  0x14   : > { %194 = vmatpush.msra.mxu0 %v189_v0  ;;  %310 = vmatpush.msra.mxu1 %v189_v0  ;;  %v186_v3 = vld [vmem:[%s590_s1 + $0x60] sm:$0xff]  ;;  %v185_v4 = vld [vmem:[%s590_s1 + $0x58] sm:$0xff]  ;;  %v184_v5 = vld [vmem:[%s590_s1 + $0x50] sm:$0xff]  ;;  %s303_s6 = sshll.u32 %s600_s19, 3  ;;  %p385_p11 = scmp.ne.s32.totalorder %s383_s9, %s384_s10 }
  0x15   : > { %v183_v6 = vld [vmem:[%s590_s1 + $0x48] sm:$0xff]  ;;  %v182_v7 = vld [vmem:[%s590_s1 + $0x40] sm:$0xff]  ;;  %v181_v8 = vld [vmem:[%s590_s1 + $0x38] sm:$0xff]  ;;  %s169_s20 = scalar_lea.vmem %s589_s0, %s303_s6  ;;  %s164_s6 = scalar_lea.vmem [#allocation2], %s301_s26 }
  0x16   : > { %195 = vmatpush.msra.mxu0 %v188_v1  ;;  %311 = vmatpush.msra.mxu1 %v188_v1  ;;  %v180_v9 = vld [vmem:[%s590_s1 + $0x30] sm:$0xff]  ;;  %v179_v10 = vld [vmem:[%s590_s1 + $0x28] sm:$0xff]  ;;  %v178_v11 = vld [vmem:[%s590_s1 + $0x20] sm:$0xff]  ;;  %s232_s7 = sshll.u32 %s164_s6, 4  ;;  %p386_p12 = pnand %p385_p11, %p492_p5  ;;  %s233_s7 = int_to_ptr.vmem [resolvable:$true] %s232_s7 }
  0x17   : > { %v177_v12 = vld [vmem:[%s590_s1 + $0x18] sm:$0xff]  ;;  %v176_v13 = vld [vmem:[%s590_s1 + $0x10] sm:$0xff]  ;;  %v175_v14 = vld [vmem:[%s590_s1 + $0x8] sm:$0xff]  ;;  %p389_p0 = scmp.lt.s32.totalorder %s383_s9, %s592_s3 }
  0x18   : > { %196 = vmatpush.msra.mxu0 %v187_v2  ;;  %312 = vmatpush.msra.mxu1 %v187_v2  ;;  %v174_v15 = vld [vmem:[%s590_s1] sm:$0xff]  ;;  %v173_v17 = vld [vmem:[%s169_s20 + $0x8] sm:$0xff]  ;;  %p387_p13 = pneg %p386_p12 }
  0x19   : > { %v172_v16 = vld [vmem:[%s169_s20] sm:$0xff]  ;;  %s388_s20 = scalar_lea.hbm %s592_s3, 32 }
  0x1a   : > { %197 = vmatpush.msra.mxu0 %v186_v3  ;;  %313 = vmatpush.msra.mxu1 %v186_v3  ;;  %v367_v18 = vld [vmem:[%s591_s2] ss:$0 sm:$0xff]  ;;  %p390_p1 = scmp.lt.s32.totalorder %s388_s20, %s384_s10 }
  0x1c   : > { %198 = vmatpush.msra.mxu0 %v185_v4  ;;  %314 = vmatpush.msra.mxu1 %v185_v4  ;;  %p391_p2 = por %p390_p1, %p389_p0 }
  0x1e   : > { %199 = vmatpush.msra.mxu0 %v184_v5  ;;  %315 = vmatpush.msra.mxu1 %v184_v5  ;;  %p392_p3 = pnand %p391_p2, %p387_p13 }
  0x20   : > { %200 = vmatpush.msra.mxu0 %v183_v6  ;;  %316 = vmatpush.msra.mxu1 %v183_v6 }
  0x22   : > { %201 = vmatpush.msra.mxu0 %v182_v7  ;;  %317 = vmatpush.msra.mxu1 %v182_v7 }
  0x24   : > { %202 = vmatpush.msra.mxu0 %v181_v8  ;;  %318 = vmatpush.msra.mxu1 %v181_v8 }
  0x26   : > { %203 = vmatpush.msra.mxu0 %v180_v9  ;;  %319 = vmatpush.msra.mxu1 %v180_v9 }
  0x28   : > { %204 = vmatpush.msra.mxu0 %v179_v10  ;;  %320 = vmatpush.msra.mxu1 %v179_v10 }
  0x2a   : > { %205 = vmatpush.msra.mxu0 %v178_v11  ;;  %321 = vmatpush.msra.mxu1 %v178_v11 }
  0x2c   : > { %206 = vmatpush.msra.mxu0 %v177_v12  ;;  %322 = vmatpush.msra.mxu1 %v177_v12 }
  0x2e   : > { %207 = vmatpush.msra.mxu0 %v176_v13  ;;  %323 = vmatpush.msra.mxu1 %v176_v13 }
  0x30   : > { %208 = vmatpush.msra.mxu0 %v175_v14  ;;  %324 = vmatpush.msra.mxu1 %v175_v14 }
  0x32   : > { %209 = vmatpush.msra.mxu0 %v174_v15  ;;  %325 = vmatpush.msra.mxu1 %v174_v15 }
  0x33   : > { %210 = vmatmul.f32.vlgmr.msra.gmra.mxu0 %v172_v16  ;;  %213 = vmatmul.f32.vlgmr.msra.gmra.mxu1 %v173_v17 }
  0xb0   : > { %v211_v19 = vpop.f32.mrf.mxu0  ;;  %v214_v20 = vpop.f32.mrf.mxu1 }
  0xb1   : > { %v212_v21 = vadd.f32 %v367_v18, %v211_v19  ;;  %v215_v22 = vadd.f32 %v367_v18, %v214_v20 }
  0xb3   : > { %217 = vst [vmem:[%s164_s6] sm:$0xff] %v212_v21 }
  0xb4   : > { %218 = vst [vmem:[%s164_s6 + $0x8] sm:$0xff] %v215_v22 }
  0xb5   : > { %395 = shalt.err (!%p392_p3)
}
  0xb6   : > { %s432_s25 = smov 128   ;;  %s433_s26 = smov 8  }
  0xb7   : > { %326 = dma.vmem_to_hbm [thread:$0]  (%p492_p5), %s233_s7, 256, %s235_s8, %s220_s16, %s432_s25, %s432_s25, %s433_s26  }
  0xb8 PF: > { %p332_p4 = scmp.ge.s32.totalorder %s430_s15, 2  ;;  %s249_s27 = sand.u32 1, %s418_s12  }
  0xb9   : > { %s250_s28 = scalar_lea.sflag [#allocation3], %s249_s27 }
  0xba   : > { %p329_p7 = pnand %p332_p4, %p496_p6 }
  0xbc   : > { %p330_p8 = pneg %p329_p7 }
  0xbe   : > { %413 = dma.done.wait (%p330_p8), %s250_s28, 256  }
  0xbf   : > { %415 = vsyncadd (%p330_p8), %s250_s28, 4294967040  ;;  %p13_p9 = scmp.ge.s32.totalorder %s479_s18, 4   ;;  %s595_s12 = smov %s422_s13 }
  0xc0   : > { %s596_s13 = smov %s426_s14  ;;  %s597_s14 = smov %s490_s21 }
  0xc1   : > { %s598_s15 = smov %s479_s18  ;;  %15 = sbr.rel (!%p13_p9) target bundleno = 3 (0x3), region = 67 }
  0xc6   :  { %256 = vsyncpa [#allocation3], 1 }
  0xc7   :  { %258 = vsyncpa [#allocation3 + $0x1], 1 }

</bundles_post_ra>
